<compile_context>
chip_gen: v7x
topology: tpu7x:2x2x1
jax: 0.10.0
libtpu: 0.0.40
codegen_flags: <defaults>
</compile_context>

<pallas_src>
import functools

import jax
import jax.numpy as jnp
from jax.experimental import pallas as pl
from jax.experimental.pallas import tpu as pltpu


def _round_up(a: int, m: int) -> int:
    return ((a + m - 1) // m) * m


def _vmem_limit_cap() -> int:
    """Per-chip safe scoped-VMEM cap (~78% of physical, never above 100 MiB)."""
    try:
        cap = int(getattr(pltpu.get_tpu_info(), "vmem_capacity_bytes"))
    except Exception:
        cap = 64 << 20  # conservative fallback (safe on every generation)
    return min(int(cap * 0.78), 100 << 20)


def _pick_col_tile(c: int, max_tile: int) -> int:
    """Largest divisor of c that is a multiple of 256 (preferred for the
    2x256x256 MXUs on v6e/v7x), else a multiple of 128, and <= max_tile.
    Falls back to the full width (single column stripe)."""
    for align in (256, 128):
        t = (max(max_tile, align) // align) * align
        while t >= align:
            if c % t == 0:
                return t
            t -= align
    return c


def _mlp_kernel(x_ref, w_ref, b_ref, o_ref, *, approximate_gelu: bool):
    # x_ref: (tm, C)  w_ref: (C, tn)  b_ref: (1, tn) f32  o_ref: (tm, tn)
    # MXU matmul (bf16 operands on the fast path) with f32 accumulation.
    y = jnp.dot(x_ref[...], w_ref[...], preferred_element_type=jnp.float32)
    y = y + b_ref[...]  # bias broadcast over rows, f32
    if approximate_gelu:
        # tanh-approx GELU: transcendental goes to the otherwise-idle EUP slot.
        c = jnp.float32(0.7978845608028654)  # sqrt(2/pi)
        y = 0.5 * y * (1.0 + jnp.tanh(c * (y + 0.044715 * (y * y * y))))
    else:
        # Exact erf GELU -> matches torch.nn.GELU default numerics.
        y = 0.5 * y * (1.0 + jax.lax.erf(y * jnp.float32(0.7071067811865476)))
    # Dropout(p=0.0) is the identity -> nothing to do.
    o_ref[...] = y.astype(o_ref.dtype)


def prepare_mlp_params(w, b, *, param_dtype=jnp.bfloat16):
    """One-time parameter prep (hoisted out of the per-call path).

    w: (C_out, C_in) torch nn.Linear weight -> returned as (C_in, C_out) in
       `param_dtype` (bf16 by default: halves weight HBM bytes, native MXU).
    b: (C_out,) bias, kept in f32 (added after the f32 accumulation).
    """
    w_t = jnp.asarray(w).T.astype(param_dtype)
    b = jnp.asarray(b).astype(jnp.float32)
    return w_t, b


def mlp_forward(x, w_t, b, *, tm=512, compute_dtype=jnp.bfloat16,
                out_dtype=None, approximate_gelu=False):
    """y = dropout(gelu(x @ W^T + b)), p = 0.

    x:   (..., C) activations.
    w_t: (C, C) pre-transposed weight from `prepare_mlp_params`.
    b:   (C,)   bias.
    compute_dtype: MXU operand dtype (bf16 default; None => keep x/w_t dtypes,
                   e.g. an exact-f32 path).  Accumulation is always f32.
    out_dtype: output storage dtype (defaults to x.dtype; pass bf16 to halve
               store traffic when the consumer tolerates it).
    """
    orig_shape = x.shape
    C = orig_shape[-1]
    if out_dtype is None:
        out_dtype = x.dtype
    M = 1
    for d in orig_shape[:-1]:
        M *= int(d)
    x2 = x.reshape(M, C)

    if compute_dtype is not None:
        if x2.dtype != jnp.dtype(compute_dtype):
            x2 = x2.astype(compute_dtype)   # one cheap pass; halves x DMA bytes
        if w_t.dtype != jnp.dtype(compute_dtype):
            w_t = w_t.astype(compute_dtype)  # no-op when prepared as bf16
    b2 = b.astype(jnp.float32).reshape(1, C)

    in_bytes = jnp.dtype(x2.dtype).itemsize
    w_bytes = jnp.dtype(w_t.dtype).itemsize
    out_bytes = jnp.dtype(out_dtype).itemsize

    # Row tile: multiple of 16 for sub-32-bit operands (2 rows per sublane).
    row_align = 16 if in_bytes < 4 else 8
    tm_eff = min(_round_up(tm, row_align), _round_up(M, row_align))

    chip_limit = _vmem_limit_cap()
    budget = int(chip_limit * 0.85)          # pipeline slack inside the limit

    def footprint(tm_, tn_):
        # double-buffered x / weight stripe / bias / output tiles
        return 2 * (tm_ * C * in_bytes + C * tn_ * w_bytes
                    + tm_ * tn_ * out_bytes + tn_ * 4)

    # Preferred schedule: weight fully resident (single column stripe) so x is
    # read from HBM exactly once; shrink the row tile first if needed.
    tn = C
    while footprint(tm_eff, tn) > budget and tm_eff > row_align:
        tm_eff = max(row_align, _round_up(tm_eff // 2, row_align))
    if footprint(tm_eff, tn) > budget:
        # Very large C: tile the output columns (weight stripe <= ~half budget).
        tn_max = max(128, (budget // 2) // max(1, 2 * C * w_bytes))
        tn = _pick_col_tile(C, tn_max)
        while footprint(tm_eff, tn) > budget and tm_eff > row_align:
            tm_eff = max(row_align, _round_up(tm_eff // 2, row_align))

    grid = (C // tn, pl.cdiv(M, tm_eff))     # cols OUTER, rows INNER

    vmem_limit = min(chip_limit,
                     max(int(1.4 * footprint(tm_eff, tn)) + (8 << 20), 32 << 20))

    kernel = functools.partial(_mlp_kernel, approximate_gelu=approximate_gelu)

    # TODO(synk): on v7x, give the constant-index weight stripe a single buffer
    # (pipeline_mode=pl.Buffered(1)) and spend the freed VMEM on a larger tm.
    out = pl.pallas_call(
        kernel,
        out_shape=jax.ShapeDtypeStruct((M, C), out_dtype),
        grid_spec=pltpu.PrefetchScalarGridSpec(
            num_scalar_prefetch=0,
            grid=grid,
            in_specs=[
                # x rows: full-C last dim (no feature padding); block index
                # depends only on the inner row axis -> read exactly once
                # per column stripe.
                pl.BlockSpec((tm_eff, C), lambda j, i: (i, 0)),
                # weight stripe: constant across inner rows -> DMA'd once per
                # column stripe (once total in the resident-weight schedule).
                pl.BlockSpec((C, tn), lambda j, i: (0, j)),
                # bias stripe (f32).
                pl.BlockSpec((1, tn), lambda j, i: (0, j)),
            ],
            out_specs=pl.BlockSpec((tm_eff, tn), lambda j, i: (i, j)),
        ),
        compiler_params=pltpu.CompilerParams(
            dimension_semantics=("parallel", "parallel"),
            vmem_limit_bytes=vmem_limit,
        ),
    )(x2, w_t, b2)

    return out.reshape(orig_shape)


if __name__ == "__main__":
    # Small deterministic setup: batch=2, tokens=8, in_features=32.
    B, N, C = 2, 8, 32
    key = jax.random.PRNGKey(0)
    kx, kw, kb = jax.random.split(key, 3)

    x = jax.random.normal(kx, (B, N, C), dtype=jnp.float32)
    # Deterministic "nn.Linear(in_features, in_features)" parameters.
    bound = 1.0 / float(C) ** 0.5
    w = jax.random.uniform(kw, (C, C), minval=-bound, maxval=bound, dtype=jnp.float32)
    b = jax.random.uniform(kb, (C,), minval=-bound, maxval=bound, dtype=jnp.float32)

    # Reference in plain JAX (exact GELU; dropout p=0 is the identity).
    ref = x @ w.T + b
    ref = 0.5 * ref * (1.0 + jax.lax.erf(ref / jnp.sqrt(2.0)))

    # Default fast path: bf16 weight storage + bf16 MXU operands, f32 accum.
    w_t_bf16, b_prep = prepare_mlp_params(w, b)
    out_bf16 = mlp_forward(x, w_t_bf16, b_prep)
    jax.block_until_ready(out_bf16)
    assert out_bf16.shape == x.shape and out_bf16.dtype == x.dtype
    assert jnp.allclose(out_bf16, ref, atol=5e-2, rtol=5e-2), "bf16 path mismatch"

    # Exact-f32 path (numerics parity with torch's default GELU).
    w_t_f32, _ = prepare_mlp_params(w, b, param_dtype=jnp.float32)
    out_f32 = mlp_forward(x, w_t_f32, b_prep, compute_dtype=None)
    jax.block_until_ready(out_f32)
    assert jnp.allclose(out_f32, ref, atol=1e-5, rtol=1e-5), "f32 path mismatch"

    print("KERNEL_OK")
</pallas_src>

<mosaic_0001>
module attributes {stable_mosaic.version = 11 : i64} {
  func.func @_mlp_kernel(%arg0: i32, %arg1: i32, %arg2: memref<16x32xbf16, #tpu.memory_space<vmem>>, %arg3: memref<32x32xbf16, #tpu.memory_space<vmem>>, %arg4: memref<1x32xf32, #tpu.memory_space<vmem>>, %arg5: memref<16x32xf32, #tpu.memory_space<vmem>>) attributes {dimension_semantics = [#tpu.dimension_semantics<parallel>, #tpu.dimension_semantics<parallel>], iteration_bounds = array<i64: 1, 1>, scalar_prefetch = 0 : i64, scratch_operands = 0 : i64, tpu.core_type = #tpu.core_type<tc>, window_params = [{transform_indices = @transform_0, window_bounds = array<i64: 16, 32>}, {transform_indices = @transform_1, window_bounds = array<i64: 32, 32>}, {transform_indices = @transform_2, window_bounds = array<i64: 1, 32>}, {transform_indices = @transform_3, window_bounds = array<i64: 16, 32>}]} {
    %c0 = arith.constant 0 : index
    %c0_0 = arith.constant 0 : index
    %0 = vector.load %arg2[%c0, %c0_0] : memref<16x32xbf16, #tpu.memory_space<vmem>>, vector<16x32xbf16>
    %c0_1 = arith.constant 0 : index
    %c0_2 = arith.constant 0 : index
    %1 = vector.load %arg3[%c0_1, %c0_2] : memref<32x32xbf16, #tpu.memory_space<vmem>>, vector<32x32xbf16>
    %cst = arith.constant dense<0.000000e+00> : vector<16x32xf32>
    %2 = tpu.matmul %0, %1, %cst {dimension_numbers = #tpu.dot_dimension_numbers<[1], [0], [0], [1], [0, 0, 1, 1], [], []>} : vector<16x32xbf16>, vector<32x32xbf16>, vector<16x32xf32> -> vector<16x32xf32>
    %c0_3 = arith.constant 0 : index
    %c0_4 = arith.constant 0 : index
    %3 = vector.load %arg4[%c0_3, %c0_4] : memref<1x32xf32, #tpu.memory_space<vmem>>, vector<1x32xf32>
    %4 = vector.broadcast %3 : vector<1x32xf32> to vector<16x32xf32>
    %5 = arith.addf %2, %4 : vector<16x32xf32>
    %cst_5 = arith.constant 5.000000e-01 : f32
    %6 = vector.broadcast %cst_5 : f32 to vector<16x32xf32>
    %7 = arith.mulf %6, %5 : vector<16x32xf32>
    %cst_6 = arith.constant 0.707106769 : f32
    %8 = vector.broadcast %cst_6 : f32 to vector<16x32xf32>
    %9 = arith.mulf %5, %8 : vector<16x32xf32>
    %10 = math.erf %9 : vector<16x32xf32>
    %cst_7 = arith.constant 1.000000e+00 : f32
    %11 = vector.broadcast %cst_7 : f32 to vector<16x32xf32>
    %12 = arith.addf %11, %10 : vector<16x32xf32>
    %13 = arith.mulf %7, %12 : vector<16x32xf32>
    %c0_8 = arith.constant 0 : index
    %c0_9 = arith.constant 0 : index
    %14 = vector.load %arg5[%c0_8, %c0_9] : memref<16x32xf32, #tpu.memory_space<vmem>>, vector<16x32xf32>
    tpu.vector_store %arg5[%c0_8, %c0_9], %13 {strides = array<i32>} : memref<16x32xf32, #tpu.memory_space<vmem>>, vector<16x32xf32>,
    return
  }
  func.func @transform_0(%arg0: i32, %arg1: i32) -> (i32, i32) {
    %c0_i32 = arith.constant 0 : i32
    %c0_i32_0 = arith.constant 0 : i32
    return %arg1, %c0_i32 : i32, i32
  }
  func.func @transform_1(%arg0: i32, %arg1: i32) -> (i32, i32) {
    %c0_i32 = arith.constant 0 : i32
    %c0_i32_0 = arith.constant 0 : i32
    return %c0_i32, %arg0 : i32, i32
  }
  func.func @transform_2(%arg0: i32, %arg1: i32) -> (i32, i32) {
    %c0_i32 = arith.constant 0 : i32
    %c0_i32_0 = arith.constant 0 : i32
    return %c0_i32, %arg0 : i32, i32
  }
  func.func @transform_3(%arg0: i32, %arg1: i32) -> (i32, i32) {
    %c0_i32 = arith.constant 0 : i32
    return %arg1, %arg0 : i32, i32
  }
}

</mosaic_0001>

<bundles_post_ra>
// kernel: tpu_custom_call.1
= control target key start
LH: loop header
LB: loop body
LE: loop exit
PB: predicated region body
PF: predicated region fallthrough
CT: control target
= control target key end

     0   :  { %8 = vsyncpa [#allocation3], 0  ;;  %s324_s0 = inlined_call_operand.hbm [shape: bf16[16,32], index: 0, kind: input, shape index: {}]   ;;  %s325_s1 = inlined_call_operand.hbm [shape: bf16[32,32], index: 1, kind: input, shape index: {}]   ;;  %s326_s2 = inlined_call_operand.vmem [shape: f32[1,32], index: 2, kind: input, shape index: {}]   ;;  %s327_s3 = inlined_call_operand.hbm [shape: f32[16,32], index: 3, kind: output, shape index: {}]  }
   0x1   :  { %9 = vsyncpa [#allocation6], 0 }
   0x2   :  { %10 = vsyncpa [#allocation4], 0  ;;  %s253_s12 = smov [#allocation2]   ;;  %s181_s16 = scalar_lea.hbm %s324_s0, 128 }
   0x3   :  { %s16_s13 = sshll.u32 %s253_s12, 4  ;;  %p182_p0 = scmp.ne.s32.totalorder %s324_s0, %s181_s16  ;;  %s17_s13 = int_to_ptr.vmem [resolvable:$true] %s16_s13 }
   0x4   :  { %p185_p1 = scmp.lt.u32.totalorder %s181_s16, %s324_s0 }
   0x6   :  { %p187_p2 = pnand %p185_p1, %p182_p0 }
   0x8   :  { %190 = shalt.err (!%p187_p2)
}
   0x9   :  { %s191_s21 = scalar_lea.vmem %s17_s13, 128  ;;  %p196_p4 = scmp.lt.s32.totalorder %s17_s13, %s17_s13 }
   0xa   :  { %p192_p3 = scmp.ne.s32.totalorder %s17_s13, %s191_s21  ;;  %p197_p5 = scmp.lt.s32.totalorder %s191_s21, %s191_s21 }
   0xc   :  { %p198_p6 = por %p197_p5, %p196_p4 }
   0xe   :  { %p199_p7 = pnand %p198_p6, %p192_p3 }
  0x10   :  { %202 = shalt.err (!%p199_p7)
}
  0x11   :  { %s254_s22 = smov 64   ;;  %s255_s23 = smov 4  }
  0x12   :  { %22 = dma.hbm_to_vmem [thread:$0]  %s324_s0, 128, %s17_s13, [#allocation3], %s254_s22, %s254_s22, %s255_s23  }
  0x13   :  { %s256_s26 = smov [#allocation5]   ;;  %s203_s30 = scalar_lea.hbm %s325_s1, 256 }
  0x14   :  { %s28_s27 = sshll.u32 %s256_s26, 4  ;;  %p204_p8 = scmp.ne.s32.totalorder %s325_s1, %s203_s30  ;;  %s29_s27 = int_to_ptr.vmem [resolvable:$true] %s28_s27 }
  0x15   :  { %p207_p9 = scmp.lt.u32.totalorder %s203_s30, %s325_s1 }
  0x17   :  { %p209_p10 = pnand %p207_p9, %p204_p8 }
  0x19   :  { %212 = shalt.err (!%p209_p10)
}
  0x1a   :  { %s213_s8 = scalar_lea.vmem %s29_s27, 256  ;;  %p218_p12 = scmp.lt.s32.totalorder %s29_s27, %s29_s27 }
  0x1b   :  { %p214_p11 = scmp.ne.s32.totalorder %s29_s27, %s213_s8  ;;  %p219_p13 = scmp.lt.s32.totalorder %s213_s8, %s213_s8 }
  0x1d   :  { %p220_p0 = por %p219_p13, %p218_p12 }
  0x1f   :  { %p221_p1 = pnand %p220_p0, %p214_p11 }
  0x21   :  { %224 = shalt.err (!%p221_p1)
}
  0x22   :  { %34 = dma.hbm_to_vmem [thread:$0]  %s325_s1, 256, %s29_s27, [#allocation6], %s254_s22, %s254_s22, %s255_s23  }
  0x23   :  { %247 = dma.done.wait [#allocation3], 128  }
  0x24   :  { %248 = vsyncadd [#allocation3], 4294967168 }
  0x25   :  { %249 = dma.done.wait [#allocation6], 256  }
  0x26   :  { %250 = vsyncadd [#allocation6], 4294967040  ;;  %v257_v0 = vmov 0.0   ;;  %vm258_vm0 = vmmov 0   ;;  %v174_v1 = vld [vmem:[#allocation5] sm:$0xff]   ;;  %v175_v2 = vld [vmem:[#allocation5 + $0x8] sm:$0xff]  }
  0x27   :  { %157 = vmatprep.subr.bf16.mxu0 %v257_v0  ;;  %161 = vmatprep.mubr.msk.bf16.mxu0 %vm258_vm0, %v257_v0  ;;  %v176_v3 = vld [vmem:[#allocation2] sm:$0xff]   ;;  %vm74_vm1 = vcmask 261120   ;;  %s259_s1 = smov [#allocation7]  }
  0x28   :  { %158 = vmatpush3.bf16.msra.mxu0 %v174_v1  ;;  %v149_v4 = vld [vmem:[%s326_s2] ss:$0 sm:$0xff]  ;;  %s136_s12 = sshll.u32 %s259_s1, 4  ;;  %s137_s12 = int_to_ptr.vmem [resolvable:$true] %s136_s12 }
  0x29   :  { %159 = vmatprep.subr.bf16.mxu0 %v257_v0  ;;  %s225_s2 = scalar_lea.vmem %s137_s12, 256  ;;  %p230_p3 = scmp.lt.s32.totalorder %s137_s12, %s137_s12 }
  0x2a   :  { %p226_p2 = scmp.ne.s32.totalorder %s137_s12, %s225_s2  ;;  %p231_p4 = scmp.lt.s32.totalorder %s225_s2, %s225_s2 }
  0x2c   :  { %160 = vmatpush3.bf16.msra.mxu0 %v175_v2  ;;  %p232_p5 = por %p231_p4, %p230_p3 }
  0x2e   :  { %p233_p6 = pnand %p232_p5, %p226_p2 }
  0x2f   :  { %162 = vmatmul.mubr.msk.bf16.vlgmr.msra.gmra.mrb[0].mxu0 %vm74_vm1, %v176_v3 }
 0x102   :  { %v112_v5 = vpop.f32.mrb[0].mxu0 }
 0x103   :  { %v113_v6 = vadd.f32 %v149_v4, %v112_v5  ;;  %v163_v7 = vpop.f32.mrb[1].mxu0 }
 0x104   :  { %v115_v8 = vpop.f32.mrb[2].mxu0 }
 0x105   :  { %v121_v9 = vmul.f32 0.70710677, %v113_v6  ;;  %v116_v10 = vadd.f32 %v149_v4, %v115_v8  ;;  %v164_v11 = vpop.f32.mrb[3].mxu0  ;;  %v119_v14 = vmul.f32 0.5, %v113_v6 }
 0x107   :  { %177 = verf.f32 %v121_v9  ;;  %v122_v12 = vmul.f32 0.70710677, %v116_v10  ;;  %v120_v18 = vmul.f32 0.5, %v116_v10 }
 0x109   :  { %179 = verf.f32 %v122_v12 }
 0x111   :  { %v178_v13 = vpop.eup %177 }
 0x112   :  { %v125_v15 = vadd.f32 1.0, %v178_v13 }
 0x113   :  { %v180_v16 = vpop.eup %179 }
 0x114   :  { %v127_v17 = vmul.f32 %v125_v15, %v119_v14  ;;  %v126_v19 = vadd.f32 1.0, %v180_v16 }
 0x116   :  { %129 = vst.msk [vmem:[#allocation7] sm:$0xff] %vm74_vm1, %v127_v17  ;;  %v128_v20 = vmul.f32 %v126_v19, %v120_v18 }
 0x118   :  { %130 = vst.msk [vmem:[#allocation7 + $0x8] sm:$0xff] %vm74_vm1, %v128_v20 }
 0x119   :  { %236 = shalt.err (!%p233_p6)
}
 0x11a   :  { %s237_s15 = scalar_lea.hbm %s327_s3, 256 }
 0x11b   :  { %p238_p7 = scmp.ne.s32.totalorder %s327_s3, %s237_s15  ;;  %p241_p8 = scmp.lt.u32.totalorder %s237_s15, %s327_s3 }
 0x11d   :  { %p243_p9 = pnand %p241_p8, %p238_p7 }
 0x11f   :  { %246 = shalt.err (!%p243_p9)
}
 0x120   :  { %s260_s20 = smov 128   ;;  %s261_s21 = smov 8  }
 0x121   :  { %142 = dma.vmem_to_hbm [thread:$0]  %s137_s12, 256, %s327_s3, [#allocation4], %s260_s20, %s260_s20, %s261_s21  }
 0x122   :  { %251 = dma.done.wait [#allocation4], 256  }
 0x123   :  { %252 = vsyncadd [#allocation4], 4294967040 }
 0x124   :  { %146 = vsyncpa [#allocation3], 1 }
 0x125   :  { %147 = vsyncpa [#allocation6], 1 }
 0x126   :  { %148 = vsyncpa [#allocation4], 1 }

</bundles_post_ra>
